<compile_context>
chip_gen: v7x
topology: tpu7x:2x2x1
jax: 0.10.0
libtpu: 0.0.40
codegen_flags: <defaults>
</compile_context>

<pallas_src>
import functools
import math

import jax
import jax.numpy as jnp
from jax import lax
from jax.experimental import pallas as pl
from jax.experimental.pallas import tpu as pltpu

_LANE = 128                              # hidden/output feature pad width
_SUBLANE = 8                             # batch tiles are multiples of this
_MAX_TB = 512                            # batch-tile cap (fills 256-row MXU)
_VMEM_DATA_BUDGET = 24 * 1024 * 1024     # data budget; safe on v7x (64 MiB phys)


def _cdiv(a, b):
    return -(-a // b)


def _round_up(n, m):
    return _cdiv(n, m) * m


def _hidden_activ(y, name):
    """Hidden-layer activation in f32 (VPU/EUP). Mirrors the PyTorch branch."""
    if name == "softplus":
        return jax.nn.softplus(y)
    if name == "sigmoid":
        return jax.nn.sigmoid(y)
    if name == "relu":
        return jnp.maximum(y, 0.0)
    if name == "leakyrelu":
        return jnp.where(y > 0, y, 0.01 * y)     # PyTorch default slope 0.01
    if name == "None" or name is None:
        return y
    raise Exception("bad activation function")


def _last_activ(y, name, valid):
    """Last-layer activation. `valid` masks padded softmax logits."""
    if name == "sigmoid":
        return jax.nn.sigmoid(y)
    if name == "softmax":
        if valid < y.shape[-1]:
            col = lax.broadcasted_iota(jnp.int32, y.shape, y.ndim - 1)
            y = jnp.where(col < valid, y, -1e30)
        return jax.nn.softmax(y, axis=-1)
    if name == "None":
        return y
    raise Exception("bad activation function for last layer")


def _mlp_fused_kernel(*refs, num_layers, activ, last_layer_activ, matmul_dtype,
                      out_valid):
    """Fused MLP body. refs = (x, w0, b0, ..., w_{L-1}, b_{L-1}, out)."""
    x_ref = refs[0]
    o_ref = refs[1 + 2 * num_layers]

    act = x_ref[...]                      # already in matmul dtype (bf16)
    for k in range(num_layers):
        w_ref = refs[1 + 2 * k]
        b_ref = refs[2 + 2 * k]
        # MXU matmul: bf16 inputs, f32 accumulation; bias add in f32.
        y = jnp.dot(act, w_ref[...], preferred_element_type=jnp.float32) + b_ref[...]
        if k < num_layers - 1 or last_layer_activ is None:
            a = _hidden_activ(y, activ)
        else:
            a = _last_activ(y, last_layer_activ, out_valid)
        act = a if k == num_layers - 1 else a.astype(matmul_dtype)
    o_ref[...] = act.astype(o_ref.dtype)


@functools.partial(
    jax.jit,
    static_argnames=("activ", "last_layer_activ", "out_valid", "tb",
                     "matmul_dtype", "vmem_limit_bytes"))
def _fused_mlp_call(x, weights, biases, *, activ, last_layer_activ, out_valid,
                    tb, matmul_dtype, vmem_limit_bytes):
    B, din = x.shape
    num_layers = len(weights)
    out_pad = weights[-1].shape[1]

    # x: batch-tiled, full (unpadded) feature width as the last block dim.
    in_specs = [pl.BlockSpec((tb, din), lambda i: (i, 0))]
    flat_inputs = [x]
    for w, b in zip(weights, biases):
        # Constant index_map -> weights/biases stay VMEM-resident across tiles.
        in_specs.append(pl.BlockSpec(w.shape, lambda i: (0, 0)))
        in_specs.append(pl.BlockSpec(b.shape, lambda i: (0, 0)))
        flat_inputs += [w, b]

    kernel = functools.partial(
        _mlp_fused_kernel, num_layers=num_layers, activ=activ,
        last_layer_activ=last_layer_activ, matmul_dtype=matmul_dtype,
        out_valid=out_valid)

    return pl.pallas_call(
        kernel,
        out_shape=jax.ShapeDtypeStruct((B, out_pad), jnp.float32),
        grid=(_cdiv(B, tb),),
        in_specs=in_specs,
        out_specs=pl.BlockSpec((tb, out_pad), lambda i: (i, 0)),
        compiler_params=pltpu.CompilerParams(
            dimension_semantics=("parallel",),        # batch tiles across TCs
            vmem_limit_bytes=vmem_limit_bytes),
    )(*flat_inputs)


class MLPPallas:
    """Mirror of PyTorch MLP: layers = [input_size] + hdepth*[hwidth] + [output_size]."""

    def __init__(self, input_size, hwidth, hdepth, output_size,
                 activ="leakyrelu", last_layer_activ=None,
                 matmul_dtype=jnp.bfloat16, key=None):
        self.layers = [input_size] + hdepth * [hwidth] + [output_size]
        self.num_layers = len(self.layers) - 1
        self.input_size = input_size
        self.output_size = output_size
        self.activ = activ
        self.last_layer_activ = last_layer_activ
        self.matmul_dtype = matmul_dtype

        # Input (matmul K dim) stays unpadded; hidden/output padded to 128 lanes.
        self.padded = [self.layers[0]] + [_round_up(n, _LANE) for n in self.layers[1:]]
        self.out_pad = self.padded[-1]

        if key is None:
            key = jax.random.PRNGKey(0)
        self.weights = []
        self.biases = []
        for i in range(self.num_layers):
            fan_in, fan_out = self.layers[i], self.layers[i + 1]
            pin, pout = self.padded[i], self.padded[i + 1]
            key, wk, bk = jax.random.split(key, 3)
            # xavier_uniform weights (as in the PyTorch __init__)
            limit = math.sqrt(6.0 / (fan_in + fan_out))
            w = jax.random.uniform(wk, (fan_in, fan_out), jnp.float32, -limit, limit)
            # PyTorch nn.Linear default bias init
            blim = 1.0 / math.sqrt(fan_in)
            b = jax.random.uniform(bk, (1, fan_out), jnp.float32, -blim, blim)
            # Zero-pad to lane-dense shapes; zero rows/cols keep padded lanes inert.
            wp = jnp.zeros((pin, pout), jnp.float32).at[:fan_in, :fan_out].set(w)
            bp = jnp.zeros((1, pout), jnp.float32).at[:, :fan_out].set(b)
            self.weights.append(wp.astype(matmul_dtype))   # bf16 weights for the MXU
            self.biases.append(bp)                          # bias stays f32

    def _tile_and_vmem(self, B):
        """Pick a batch tile bounded by an explicit VMEM data budget."""
        din = self.layers[0]
        w_bytes = sum(int(w.size) * 2 for w in self.weights)   # bf16 resident
        b_bytes = sum(int(b.size) * 4 for b in self.biases)
        resident = 2 * (w_bytes + b_bytes)   # pipeline may hold 2 buffers each
        # double-buffered x (bf16) + out (f32) tiles, plus live act/y per layer
        per_row = 2 * (din * 2 + self.out_pad * 4) + 2 * 4 * max(self.padded)
        avail = max(_VMEM_DATA_BUDGET - resident, _SUBLANE * per_row)
        tb_cap = max(_SUBLANE, (avail // per_row) // _SUBLANE * _SUBLANE)
        bpad = _round_up(B, _SUBLANE)
        tb = min(_MAX_TB, tb_cap, bpad)
        # v7x megacore: make sure the batch grid has >= 2 steps when B is big.
        if bpad >= 512 and _cdiv(bpad, tb) < 2:
            tb = max(_SUBLANE, _round_up(_cdiv(bpad, 2), _SUBLANE))
        est = resident + tb * per_row
        vmem_limit = int(min(max(2 * est, 32 << 20), 48 << 20))
        return tb, vmem_limit

    def __call__(self, x):
        B, din = x.shape
        assert din == self.input_size
        tb, vmem_limit = self._tile_and_vmem(B)
        # Cast only (no padding pass); Pallas handles the ragged batch edge.
        x_mm = x.astype(self.matmul_dtype)
        y = _fused_mlp_call(
            x_mm, self.weights, self.biases,
            activ=self.activ, last_layer_activ=self.last_layer_activ,
            out_valid=self.output_size, tb=tb,
            matmul_dtype=self.matmul_dtype, vmem_limit_bytes=vmem_limit)
        return y[:, :self.output_size]


def _mlp_reference(x, model):
    """Pure-JAX reference using the same padded weights / dtype path."""
    act = x.astype(model.matmul_dtype)
    for k in range(model.num_layers):
        y = jnp.dot(act, model.weights[k],
                    preferred_element_type=jnp.float32) + model.biases[k]
        if k < model.num_layers - 1 or model.last_layer_activ is None:
            a = _hidden_activ(y, model.activ)
        else:
            a = _last_activ(y, model.last_layer_activ, model.output_size)
        act = a if k == model.num_layers - 1 else a.astype(model.matmul_dtype)
    return act[:, :model.output_size]


if __name__ == "__main__":
    key = jax.random.PRNGKey(0)
    key, xk, pk, pk2 = jax.random.split(key, 4)

    batch = 8
    input_size = 16
    hwidth = 32
    hdepth = 2
    output_size = 8

    x = jax.random.normal(xk, (batch, input_size), dtype=jnp.float32)

    # default config: leakyrelu hidden, no last-layer activation
    model = MLPPallas(input_size, hwidth, hdepth, output_size,
                      activ="leakyrelu", last_layer_activ=None, key=pk)
    out = jax.block_until_ready(model(x))
    ref = jax.block_until_ready(_mlp_reference(x, model))
    assert out.shape == (batch, output_size)
    assert jnp.all(jnp.isfinite(out))
    assert jnp.allclose(out, ref, atol=2e-2, rtol=2e-2)

    # exercise the masked-softmax last layer (padded logits must not leak)
    model_sm = MLPPallas(input_size, hwidth, hdepth, output_size,
                         activ="relu", last_layer_activ="softmax", key=pk2)
    out_sm = jax.block_until_ready(model_sm(x))
    assert out_sm.shape == (batch, output_size)
    assert jnp.all(jnp.isfinite(out_sm))
    assert jnp.allclose(jnp.sum(out_sm, axis=-1), 1.0, atol=1e-3)

    print("KERNEL_OK")
</pallas_src>

<mosaic_0001>
module attributes {stable_mosaic.version = 11 : i64} {
  func.func @_mlp_fused_kernel(%arg0: i32, %arg1: memref<8x16xbf16, #tpu.memory_space<vmem>>, %arg2: memref<16x128xbf16, #tpu.memory_space<vmem>>, %arg3: memref<1x128xf32, #tpu.memory_space<vmem>>, %arg4: memref<128x128xbf16, #tpu.memory_space<vmem>>, %arg5: memref<1x128xf32, #tpu.memory_space<vmem>>, %arg6: memref<128x128xbf16, #tpu.memory_space<vmem>>, %arg7: memref<1x128xf32, #tpu.memory_space<vmem>>, %arg8: memref<8x128xf32, #tpu.memory_space<vmem>>) attributes {dimension_semantics = [#tpu.dimension_semantics<parallel>], iteration_bounds = array<i64: 1>, scalar_prefetch = 0 : i64, scratch_operands = 0 : i64, tpu.core_type = #tpu.core_type<tc>, window_params = [{transform_indices = @transform_0, window_bounds = array<i64: 8, 16>}, {pipeline_mode = #tpu.pipeline_mode<synchronous>, transform_indices = @transform_1, window_bounds = array<i64: 16, 128>}, {pipeline_mode = #tpu.pipeline_mode<synchronous>, transform_indices = @transform_2, window_bounds = array<i64: 1, 128>}, {pipeline_mode = #tpu.pipeline_mode<synchronous>, transform_indices = @transform_3, window_bounds = array<i64: 128, 128>}, {pipeline_mode = #tpu.pipeline_mode<synchronous>, transform_indices = @transform_4, window_bounds = array<i64: 1, 128>}, {pipeline_mode = #tpu.pipeline_mode<synchronous>, transform_indices = @transform_5, window_bounds = array<i64: 128, 128>}, {pipeline_mode = #tpu.pipeline_mode<synchronous>, transform_indices = @transform_6, window_bounds = array<i64: 1, 128>}, {transform_indices = @transform_7, window_bounds = array<i64: 8, 128>}]} {
    %c0 = arith.constant 0 : index
    %c0_0 = arith.constant 0 : index
    %0 = vector.load %arg1[%c0, %c0_0] : memref<8x16xbf16, #tpu.memory_space<vmem>>, vector<8x16xbf16>
    %c0_1 = arith.constant 0 : index
    %c0_2 = arith.constant 0 : index
    %1 = vector.load %arg2[%c0_1, %c0_2] : memref<16x128xbf16, #tpu.memory_space<vmem>>, vector<16x128xbf16>
    %cst = arith.constant dense<0.000000e+00> : vector<8x128xf32>
    %2 = tpu.matmul %0, %1, %cst {dimension_numbers = #tpu.dot_dimension_numbers<[1], [0], [0], [1], [0, 0, 1, 1], [], []>} : vector<8x16xbf16>, vector<16x128xbf16>, vector<8x128xf32> -> vector<8x128xf32>
    %c0_3 = arith.constant 0 : index
    %c0_4 = arith.constant 0 : index
    %3 = vector.load %arg3[%c0_3, %c0_4] : memref<1x128xf32, #tpu.memory_space<vmem>>, vector<1x128xf32>
    %4 = vector.broadcast %3 : vector<1x128xf32> to vector<8x128xf32>
    %5 = arith.addf %2, %4 : vector<8x128xf32>
    %cst_5 = arith.constant 0.000000e+00 : f32
    %6 = vector.broadcast %cst_5 : f32 to vector<8x128xf32>
    %7 = arith.cmpf ogt, %5, %6 : vector<8x128xf32>
    %cst_6 = arith.constant 0.00999999977 : f32
    %8 = vector.broadcast %cst_6 : f32 to vector<8x128xf32>
    %9 = arith.mulf %8, %5 : vector<8x128xf32>
    %10 = arith.select %7, %5, %9 : vector<8x128xi1>, vector<8x128xf32>
    %11 = arith.truncf %10 : vector<8x128xf32> to vector<8x128xbf16>
    %c0_7 = arith.constant 0 : index
    %c0_8 = arith.constant 0 : index
    %12 = vector.load %arg4[%c0_7, %c0_8] : memref<128x128xbf16, #tpu.memory_space<vmem>>, vector<128x128xbf16>
    %cst_9 = arith.constant dense<0.000000e+00> : vector<8x128xf32>
    %13 = tpu.matmul %11, %12, %cst_9 {dimension_numbers = #tpu.dot_dimension_numbers<[1], [0], [0], [1], [0, 0, 1, 1], [], []>} : vector<8x128xbf16>, vector<128x128xbf16>, vector<8x128xf32> -> vector<8x128xf32>
    %c0_10 = arith.constant 0 : index
    %c0_11 = arith.constant 0 : index
    %14 = vector.load %arg5[%c0_10, %c0_11] : memref<1x128xf32, #tpu.memory_space<vmem>>, vector<1x128xf32>
    %15 = vector.broadcast %14 : vector<1x128xf32> to vector<8x128xf32>
    %16 = arith.addf %13, %15 : vector<8x128xf32>
    %cst_12 = arith.constant 0.000000e+00 : f32
    %17 = vector.broadcast %cst_12 : f32 to vector<8x128xf32>
    %18 = arith.cmpf ogt, %16, %17 : vector<8x128xf32>
    %cst_13 = arith.constant 0.00999999977 : f32
    %19 = vector.broadcast %cst_13 : f32 to vector<8x128xf32>
    %20 = arith.mulf %19, %16 : vector<8x128xf32>
    %21 = arith.select %18, %16, %20 : vector<8x128xi1>, vector<8x128xf32>
    %22 = arith.truncf %21 : vector<8x128xf32> to vector<8x128xbf16>
    %c0_14 = arith.constant 0 : index
    %c0_15 = arith.constant 0 : index
    %23 = vector.load %arg6[%c0_14, %c0_15] : memref<128x128xbf16, #tpu.memory_space<vmem>>, vector<128x128xbf16>
    %cst_16 = arith.constant dense<0.000000e+00> : vector<8x128xf32>
    %24 = tpu.matmul %22, %23, %cst_16 {dimension_numbers = #tpu.dot_dimension_numbers<[1], [0], [0], [1], [0, 0, 1, 1], [], []>} : vector<8x128xbf16>, vector<128x128xbf16>, vector<8x128xf32> -> vector<8x128xf32>
    %c0_17 = arith.constant 0 : index
    %c0_18 = arith.constant 0 : index
    %25 = vector.load %arg7[%c0_17, %c0_18] : memref<1x128xf32, #tpu.memory_space<vmem>>, vector<1x128xf32>
    %26 = vector.broadcast %25 : vector<1x128xf32> to vector<8x128xf32>
    %27 = arith.addf %24, %26 : vector<8x128xf32>
    %cst_19 = arith.constant 0.000000e+00 : f32
    %28 = vector.broadcast %cst_19 : f32 to vector<8x128xf32>
    %29 = arith.cmpf ogt, %27, %28 : vector<8x128xf32>
    %cst_20 = arith.constant 0.00999999977 : f32
    %30 = vector.broadcast %cst_20 : f32 to vector<8x128xf32>
    %31 = arith.mulf %30, %27 : vector<8x128xf32>
    %32 = arith.select %29, %27, %31 : vector<8x128xi1>, vector<8x128xf32>
    %c0_21 = arith.constant 0 : index
    %c0_22 = arith.constant 0 : index
    %33 = vector.load %arg8[%c0_21, %c0_22] : memref<8x128xf32, #tpu.memory_space<vmem>>, vector<8x128xf32>
    tpu.vector_store %arg8[%c0_21, %c0_22], %32 {strides = array<i32>} : memref<8x128xf32, #tpu.memory_space<vmem>>, vector<8x128xf32>,
    return
  }
  func.func @transform_0(%arg0: i32) -> (i32, i32) {
    %c0_i32 = arith.constant 0 : i32
    %c0_i32_0 = arith.constant 0 : i32
    return %arg0, %c0_i32 : i32, i32
  }
  func.func @transform_1(%arg0: i32) -> (i32, i32) {
    %c0_i32 = arith.constant 0 : i32
    %c0_i32_0 = arith.constant 0 : i32
    %c0_i32_1 = arith.constant 0 : i32
    return %c0_i32, %c0_i32_0 : i32, i32
  }
  func.func @transform_2(%arg0: i32) -> (i32, i32) {
    %c0_i32 = arith.constant 0 : i32
    %c0_i32_0 = arith.constant 0 : i32
    %c0_i32_1 = arith.constant 0 : i32
    return %c0_i32, %c0_i32_0 : i32, i32
  }
  func.func @transform_3(%arg0: i32) -> (i32, i32) {
    %c0_i32 = arith.constant 0 : i32
    %c0_i32_0 = arith.constant 0 : i32
    %c0_i32_1 = arith.constant 0 : i32
    return %c0_i32, %c0_i32_0 : i32, i32
  }
  func.func @transform_4(%arg0: i32) -> (i32, i32) {
    %c0_i32 = arith.constant 0 : i32
    %c0_i32_0 = arith.constant 0 : i32
    %c0_i32_1 = arith.constant 0 : i32
    return %c0_i32, %c0_i32_0 : i32, i32
  }
  func.func @transform_5(%arg0: i32) -> (i32, i32) {
    %c0_i32 = arith.constant 0 : i32
    %c0_i32_0 = arith.constant 0 : i32
    %c0_i32_1 = arith.constant 0 : i32
    return %c0_i32, %c0_i32_0 : i32, i32
  }
  func.func @transform_6(%arg0: i32) -> (i32, i32) {
    %c0_i32 = arith.constant 0 : i32
    %c0_i32_0 = arith.constant 0 : i32
    %c0_i32_1 = arith.constant 0 : i32
    return %c0_i32, %c0_i32_0 : i32, i32
  }
  func.func @transform_7(%arg0: i32) -> (i32, i32) {
    %c0_i32 = arith.constant 0 : i32
    %c0_i32_0 = arith.constant 0 : i32
    return %arg0, %c0_i32 : i32, i32
  }
}

</mosaic_0001>

<bundles_post_ra>
// kernel: _fused_mlp_call.1
= control target key start
LH: loop header
LB: loop body
LE: loop exit
PB: predicated region body
PF: predicated region fallthrough
CT: control target
= control target key end

     0   :  { %12 = vsyncpa [#allocation3], 0  ;;  %s770_s0 = inlined_call_operand.hbm [shape: bf16[8,16], index: 0, kind: input, shape index: {}]   ;;  %s771_s1 = inlined_call_operand.hbm [shape: bf16[16,128], index: 1, kind: input, shape index: {}]   ;;  %s772_s2 = inlined_call_operand.vmem [shape: f32[1,128], index: 2, kind: input, shape index: {}]   ;;  %s773_s3 = inlined_call_operand.hbm [shape: bf16[128,128], index: 3, kind: input, shape index: {}]   ;;  %s774_s4 = inlined_call_operand.vmem [shape: f32[1,128], index: 4, kind: input, shape index: {}]   ;;  %s775_s5 = inlined_call_operand.hbm [shape: bf16[128,128], index: 5, kind: input, shape index: {}]   ;;  %s776_s6 = inlined_call_operand.vmem [shape: f32[1,128], index: 6, kind: input, shape index: {}]   ;;  %s777_s7 = inlined_call_operand.hbm [shape: f32[8,128], index: 7, kind: output, shape index: {}]  }
   0x1   :  { %13 = vsyncpa [#allocation6], 0 }
   0x2   :  { %14 = vsyncpa [#allocation9], 0 }
   0x3   :  { %15 = vsyncpa [#allocation4], 0  ;;  %s623_s24 = smov [#allocation5]   ;;  %s505_s28 = scalar_lea.hbm %s771_s1, 128 }
   0x4   :  { %s31_s25 = sshll.u32 %s623_s24, 4  ;;  %p506_p0 = scmp.ne.s32.totalorder %s771_s1, %s505_s28  ;;  %s32_s25 = int_to_ptr.vmem [resolvable:$true] %s31_s25 }
   0x5   :  { %p509_p1 = scmp.lt.u32.totalorder %s505_s28, %s771_s1 }
   0x7   :  { %p511_p2 = pnand %p509_p1, %p506_p0 }
   0x9   :  { %514 = shalt.err (!%p511_p2)
}
   0xa   :  { %s515_s10 = scalar_lea.vmem %s32_s25, 128  ;;  %p520_p4 = scmp.lt.s32.totalorder %s32_s25, %s32_s25 }
   0xb   :  { %p516_p3 = scmp.ne.s32.totalorder %s32_s25, %s515_s10  ;;  %p521_p5 = scmp.lt.s32.totalorder %s515_s10, %s515_s10 }
   0xd   :  { %p522_p6 = por %p521_p5, %p520_p4 }
   0xf   :  { %p523_p7 = pnand %p522_p6, %p516_p3 }
  0x11   :  { %526 = shalt.err (!%p523_p7)
}
  0x12   :  { %s624_s11 = smov 64   ;;  %s625_s12 = smov 4  }
  0x13   :  { %37 = dma.hbm_to_vmem [thread:$0]  %s771_s1, 128, %s32_s25, [#allocation6], %s624_s11, %s624_s11, %s625_s12  }
  0x14   :  { %s626_s15 = smov [#allocation2]   ;;  %s627_s17 = smov [#allocation7]  }
  0x15   :  { %s22_s16 = sshll.u32 %s626_s15, 4  ;;  %s45_s18 = sshll.u32 %s627_s17, 4  ;;  %s23_s16 = int_to_ptr.vmem [resolvable:$true] %s22_s16  ;;  %s46_s18 = int_to_ptr.vmem [resolvable:$true] %s45_s18 }
  0x16   :  { %s527_s21 = scalar_lea.hbm %s770_s0, 64 }
  0x17   :  { %p528_p8 = scmp.ne.s32.totalorder %s770_s0, %s527_s21  ;;  %p531_p9 = scmp.lt.u32.totalorder %s527_s21, %s770_s0 }
  0x19   :  { %p533_p10 = pnand %p531_p9, %p528_p8 }
  0x1b   :  { %536 = shalt.err (!%p533_p10)
}
  0x1c   :  { %s537_s1 = scalar_lea.vmem %s23_s16, 64  ;;  %p542_p12 = scmp.lt.s32.totalorder %s23_s16, %s23_s16 }
  0x1d   :  { %p538_p11 = scmp.ne.s32.totalorder %s23_s16, %s537_s1  ;;  %p543_p13 = scmp.lt.s32.totalorder %s537_s1, %s537_s1 }
  0x1f   :  { %p544_p0 = por %p543_p13, %p542_p12 }
  0x21   :  { %p545_p1 = pnand %p544_p0, %p538_p11 }
  0x23   :  { %548 = shalt.err (!%p545_p1)
}
  0x24   :  { %25 = dma.hbm_to_vmem [thread:$0]  %s770_s0, 64, %s23_s16, [#allocation3]  }
  0x25   :  { %s549_s30 = scalar_lea.hbm %s773_s3, 1024 }
  0x26   :  { %p550_p2 = scmp.ne.s32.totalorder %s773_s3, %s549_s30  ;;  %p553_p3 = scmp.lt.u32.totalorder %s549_s30, %s773_s3 }
  0x28   :  { %p555_p4 = pnand %p553_p3, %p550_p2 }
  0x2a   :  { %558 = shalt.err (!%p555_p4)
}
  0x2b   :  { %s559_s14 = scalar_lea.vmem %s46_s18, 1024  ;;  %p564_p6 = scmp.lt.s32.totalorder %s46_s18, %s46_s18 }
  0x2c   :  { %p560_p5 = scmp.ne.s32.totalorder %s46_s18, %s559_s14  ;;  %p565_p7 = scmp.lt.s32.totalorder %s559_s14, %s559_s14 }
  0x2e   :  { %p566_p8 = por %p565_p7, %p564_p6 }
  0x30   :  { %p567_p9 = pnand %p566_p8, %p560_p5 }
  0x32   :  { %570 = shalt.err (!%p567_p9)
}
  0x33   :  { %51 = dma.hbm_to_vmem [thread:$0]  %s773_s3, 1024, %s46_s18, [#allocation6], %s624_s11, %s624_s11, %s625_s12  }
  0x34   :  { %s628_s16 = smov [#allocation8]   ;;  %s571_s21 = scalar_lea.hbm %s775_s5, 1024 }
  0x35   :  { %s59_s17 = sshll.u32 %s628_s16, 4  ;;  %p572_p10 = scmp.ne.s32.totalorder %s775_s5, %s571_s21  ;;  %s60_s17 = int_to_ptr.vmem [resolvable:$true] %s59_s17 }
  0x36   :  { %p575_p11 = scmp.lt.u32.totalorder %s571_s21, %s775_s5 }
  0x38   :  { %p577_p12 = pnand %p575_p11, %p572_p10 }
  0x3a   :  { %580 = shalt.err (!%p577_p12)
}
  0x3b   :  { %s581_s1 = scalar_lea.vmem %s60_s17, 1024  ;;  %p586_p0 = scmp.lt.s32.totalorder %s60_s17, %s60_s17 }
  0x3c   :  { %p582_p13 = scmp.ne.s32.totalorder %s60_s17, %s581_s1  ;;  %p587_p1 = scmp.lt.s32.totalorder %s581_s1, %s581_s1 }
  0x3e   :  { %p588_p2 = por %p587_p1, %p586_p0 }
  0x40   :  { %p589_p3 = pnand %p588_p2, %p582_p13 }
  0x42   :  { %592 = shalt.err (!%p589_p3)
}
  0x43   :  { %65 = dma.hbm_to_vmem [thread:$0]  %s775_s5, 1024, %s60_s17, [#allocation9], %s624_s11, %s624_s11, %s625_s12  }
  0x44   :  { %615 = dma.done.wait [#allocation3], 64  }
  0x45   :  { %616 = vsyncadd [#allocation3], 4294967232 }
  0x46   :  { %617 = dma.done.wait [#allocation6], 1152  }
  0x47   :  { %618 = vsyncadd [#allocation6], 4294966144 }
  0x48   :  { %619 = dma.done.wait [#allocation9], 1024  }
  0x49   :  { %620 = vsyncadd [#allocation9], 4294966272  ;;  %v629_v0 = vmov 0.0   ;;  %vm630_vm0 = vmmov 0   ;;  %v488_v1 = vld [vmem:[#allocation5] sm:$0xff]   ;;  %vm97_vm1 = vcmask 130048  }
  0x4a   :  { %433 = vmatprep.subr.bf16.mxu0 %v629_v0  ;;  %435 = vmatprep.mubr.msk.bf16.mxu0 %vm630_vm0, %v629_v0  ;;  %v81_v2 = vld [vmem:[#allocation2] sm:$0xf]  ;;  %v489_v3 = vld [vmem:[#allocation7] sm:$0xff]   ;;  %v490_v4 = vld [vmem:[#allocation7 + $0x8] sm:$0xff]   ;;  %s631_s28 = smov [#allocation10]  }
  0x4b   :  { %439 = vmatprep.subr.bf16.mxu1 %v629_v0  ;;  %455 = vmatprep.mubr.msk.bf16.mxu1 %vm630_vm0, %v629_v0  ;;  %v491_v5 = vld [vmem:[#allocation7 + $0x10] sm:$0xff]   ;;  %v492_v6 = vld [vmem:[#allocation7 + $0x18] sm:$0xff]   ;;  %v493_v7 = vld [vmem:[#allocation7 + $0x20] sm:$0xff]   ;;  %s381_s29 = sshll.u32 %s631_s28, 4  ;;  %s382_s29 = int_to_ptr.vmem [resolvable:$true] %s381_s29 }
  0x4c   :  { %434 = vmatpush3.bf16.msra.mxu0 %v488_v1  ;;  %440 = vmatpush3.bf16.msra.mxu1 %v489_v3  ;;  %v494_v8 = vld [vmem:[#allocation7 + $0x28] sm:$0xff]   ;;  %v495_v9 = vld [vmem:[#allocation7 + $0x30] sm:$0xff]   ;;  %v496_v10 = vld [vmem:[#allocation7 + $0x38] sm:$0xff]   ;;  %p598_p5 = scmp.lt.s32.totalorder %s382_s29, %s382_s29 }
  0x4d   :  { %459 = vmatprep.subr.bf16.mxu0 %v629_v0  ;;  %441 = vmatprep.subr.bf16.mxu1 %v629_v0  ;;  %v497_v11 = vld [vmem:[#allocation8] sm:$0xff]   ;;  %v498_v12 = vld [vmem:[#allocation8 + $0x8] sm:$0xff]   ;;  %v499_v13 = vld [vmem:[#allocation8 + $0x10] sm:$0xff]  }
  0x4e   :  { %v500_v14 = vld [vmem:[#allocation8 + $0x18] sm:$0xff]   ;;  %v501_v15 = vld [vmem:[#allocation8 + $0x20] sm:$0xff]   ;;  %v502_v16 = vld [vmem:[#allocation8 + $0x28] sm:$0xff]  }
  0x4f   :  { %436 = vmatmul.mubr.msk.bf16.vlgmr.msra.gmra.mrb[0].mxu0 %vm97_vm1, %v81_v2  ;;  %v392_v17 = vld [vmem:[%s772_s2] ss:$0 sm:$0xff]  ;;  %v504_v27 = vld [vmem:[#allocation8 + $0x38] sm:$0xff]  }
  0x50   :  { %475 = vmatprep.mubr.msk.bf16.mxu0 %vm630_vm0, %v629_v0  ;;  %442 = vmatpush3.bf16.msra.mxu1 %v490_v4  ;;  %v503_v26 = vld [vmem:[#allocation8 + $0x30] sm:$0xff]  }
  0x51   :  { %443 = vmatprep.subr.bf16.mxu1 %v629_v0  ;;  %460 = vmatpush3.bf16.msra.mxu0 %v497_v11  ;;  %v395_v28 = vld [vmem:[%s774_s4] ss:$0 sm:$0xff]  ;;  %s593_s4 = scalar_lea.vmem %s382_s29, 128 }
  0x52   :  { %461 = vmatprep.subr.bf16.mxu0 %v629_v0  ;;  %v404_v37 = vld [vmem:[%s776_s6] ss:$0 sm:$0xff]  ;;  %p594_p4 = scmp.ne.s32.totalorder %s382_s29, %s593_s4  ;;  %p599_p6 = scmp.lt.s32.totalorder %s593_s4, %s593_s4 }
  0x54   :  { %444 = vmatpush3.bf16.msra.mxu1 %v491_v5  ;;  %p600_p7 = por %p599_p6, %p598_p5 }
  0x55   :  { %445 = vmatprep.subr.bf16.mxu1 %v629_v0  ;;  %462 = vmatpush3.bf16.msra.mxu0 %v498_v12 }
  0x56   :  { %463 = vmatprep.subr.bf16.mxu0 %v629_v0  ;;  %p601_p8 = pnand %p600_p7, %p594_p4 }
  0x58   :  { %446 = vmatpush3.bf16.msra.mxu1 %v492_v6 }
  0x59   :  { %447 = vmatprep.subr.bf16.mxu1 %v629_v0  ;;  %464 = vmatpush3.bf16.msra.mxu0 %v499_v13 }
  0x5a   :  { %465 = vmatprep.subr.bf16.mxu0 %v629_v0 }
  0x5c   :  { %448 = vmatpush3.bf16.msra.mxu1 %v493_v7 }
  0x5d   :  { %449 = vmatprep.subr.bf16.mxu1 %v629_v0  ;;  %466 = vmatpush3.bf16.msra.mxu0 %v500_v14 }
  0x5e   :  { %467 = vmatprep.subr.bf16.mxu0 %v629_v0 }
  0x60   :  { %450 = vmatpush3.bf16.msra.mxu1 %v494_v8 }
  0x61   :  { %451 = vmatprep.subr.bf16.mxu1 %v629_v0  ;;  %468 = vmatpush3.bf16.msra.mxu0 %v501_v15 }
  0x62   :  { %469 = vmatprep.subr.bf16.mxu0 %v629_v0 }
  0x64   :  { %452 = vmatpush3.bf16.msra.mxu1 %v495_v9 }
  0x65   :  { %453 = vmatprep.subr.bf16.mxu1 %v629_v0  ;;  %470 = vmatpush3.bf16.msra.mxu0 %v502_v16 }
  0x66   :  { %471 = vmatprep.subr.bf16.mxu0 %v629_v0 }
  0x68   :  { %454 = vmatpush3.bf16.msra.mxu1 %v496_v10 }
  0x69   :  { %472 = vmatpush3.bf16.msra.mxu0 %v503_v26 }
  0x6a   :  { %473 = vmatprep.subr.bf16.mxu0 %v629_v0 }
  0x6d   :  { %474 = vmatpush3.bf16.msra.mxu0 %v504_v27 }
 0x122   :  { %v135_v18 = vpop.f32.mrb[0].mxu0 }
 0x123   :  { %v136_v19 = vadd.f32 %v392_v17, %v135_v18  ;;  %v437_v20 = vpop.f32.mrb[1].mxu0 }
 0x124   :  { %v138_v21 = vpop.f32.mrb[2].mxu0 }
 0x125   :  { %vm141_vm2 = vcmp.gt.f32.partialorder %v136_v19, 0.0  ;;  %v142_v22 = vmul.f32 0.01, %v136_v19  ;;  %v438_v23 = vpop.f32.mrb[3].mxu0 }
 0x127   :  { %v143_v24 = vsel %vm141_vm2, %v136_v19, %v142_v22 }
 0x128   :  { %v144_v25 = vpack.c.bf16 %v143_v24, %v143_v24 }
 0x12a   :  { %456 = vmatmul.mubr.bf16.vlgmr.msra.gmra.mrb[0].mxu1 %v144_v25 }
 0x1fd   :  { %v250_v29 = vpop.f32.mrb[0].mxu1 }
 0x1fe   :  { %v251_v30 = vadd.f32 %v395_v28, %v250_v29  ;;  %v457_v31 = vpop.f32.mrb[1].mxu1 }
 0x1ff   :  { %v253_v32 = vpop.f32.mrb[2].mxu1 }
 0x200   :  { %vm256_vm3 = vcmp.gt.f32.partialorder %v251_v30, 0.0  ;;  %v257_v33 = vmul.f32 0.01, %v251_v30  ;;  %v458_v34 = vpop.f32.mrb[3].mxu1 }
 0x202   :  { %v258_v35 = vsel %vm256_vm3, %v251_v30, %v257_v33 }
 0x203   :  { %v259_v36 = vpack.c.bf16 %v258_v35, %v258_v35 }
 0x205   :  { %476 = vmatmul.mubr.bf16.vlgmr.msra.gmra.mrb[4].mxu0 %v259_v36 }
 0x2d8   :  { %v365_v38 = vpop.f32.mrb[4].mxu0 }
 0x2d9   :  { %v366_v39 = vadd.f32 %v404_v37, %v365_v38  ;;  %v477_v40 = vpop.f32.mrb[5].mxu0 }
 0x2da   :  { %v368_v41 = vpop.f32.mrb[6].mxu0 }
 0x2db   :  { %v372_v42 = vmul.f32 0.01, %v366_v39  ;;  %v478_v43 = vpop.f32.mrb[7].mxu0  ;;  %vm371_vm4 = vcmp.gt.f32.partialorder %v366_v39, 0.0 }
 0x2dd   :  { %v373_v44 = vsel %vm371_vm4, %v366_v39, %v372_v42 }
 0x2de   :  { %374 = vst [vmem:[#allocation10] sm:$0xff] %v373_v44 }
 0x2df   :  { %604 = shalt.err (!%p601_p8)
}
 0x2e0   :  { %s605_s8 = scalar_lea.hbm %s777_s7, 128 }
 0x2e1   :  { %p606_p9 = scmp.ne.s32.totalorder %s777_s7, %s605_s8  ;;  %p609_p10 = scmp.lt.u32.totalorder %s605_s8, %s777_s7 }
 0x2e3   :  { %p611_p11 = pnand %p609_p10, %p606_p9 }
 0x2e5   :  { %614 = shalt.err (!%p611_p11)
}
 0x2e6   :  { %384 = dma.vmem_to_hbm [thread:$0]  %s382_s29, 128, %s777_s7, [#allocation4]  }
 0x2e7   :  { %621 = dma.done.wait [#allocation4], 128  }
 0x2e8   :  { %622 = vsyncadd [#allocation4], 4294967168 }
 0x2e9   :  { %388 = vsyncpa [#allocation3], 1 }
 0x2ea   :  { %389 = vsyncpa [#allocation6], 1 }
 0x2eb   :  { %390 = vsyncpa [#allocation9], 1 }
 0x2ec   :  { %391 = vsyncpa [#allocation4], 1 }

</bundles_post_ra>
